<compile_context>
chip_gen: v5e
topology: v5e:2x2
jax: 0.10.0
libtpu: 0.0.40
codegen_flags: <defaults>
</compile_context>

<pallas_src>
import functools

import jax
import jax.numpy as jnp
import numpy as np
from jax.experimental import pallas as pl
from jax.experimental.pallas import tpu as pltpu


# ---------------------------------------------------------------------------
# Kernels
# ---------------------------------------------------------------------------
def _pe_add_kernel(x_ref, pe_ref, o_ref):
    # x_ref: (TS, TB, D), pe_ref: (TS, 1, D) -> broadcast-add over batch tile.
    o_ref[...] = (x_ref[...] + pe_ref[...]).astype(o_ref.dtype)


def _pe_add_dropout_kernel(x_ref, pe_ref, bits_ref, o_ref, *, threshold, scale):
    # Training path: add PE, then inverted dropout.
    # keep iff uint32 bits >= p * 2^32  (keep prob = 1 - p); integer compare only.
    y = x_ref[...] + pe_ref[...]
    keep = bits_ref[...] >= jnp.uint32(threshold)
    o_ref[...] = jnp.where(keep, y * scale, 0.0).astype(o_ref.dtype)


# ---------------------------------------------------------------------------
# Tiling heuristic: keep one block around ~1 MiB so that double buffering of
# x / pe / (bits) / out stays well inside v5e's 16 MiB default scoped VMEM
# and v7x's 64 MiB physical VMEM.
# ---------------------------------------------------------------------------
def _choose_tiles(S, B, D, itemsize, budget_bytes=1 << 20):
    d_bytes = max(1, D * itemsize)
    if B * d_bytes <= budget_bytes:
        tb = B                                           # whole batch per block
    else:
        tb = max(8, min(B, ((budget_bytes // d_bytes) // 8) * 8))
    ts = max(1, budget_bytes // (tb * d_bytes))
    if ts >= 8:
        ts = (ts // 8) * 8                               # keep seq tile 8-aligned
    ts = min(ts, S)
    return ts, tb


# ---------------------------------------------------------------------------
# Module wrapper
# ---------------------------------------------------------------------------
class PositionalEncoding:
    def __init__(self, d_model: int, dropout: float = 0.1, max_len: int = 5000):
        self.p = float(dropout)
        # Deterministic buffer setup (matches the PyTorch __init__).
        position = np.arange(max_len, dtype=np.float32)[:, None]
        div_term = np.exp(
            np.arange(0, d_model, 2, dtype=np.float32) * (-np.log(10000.0) / d_model)
        )
        pe = np.zeros((max_len, 1, d_model), dtype=np.float32)
        pe[:, 0, 0::2] = np.sin(position * div_term)
        pe[:, 0, 1::2] = np.cos(position * div_term)
        self.pe = jnp.asarray(pe)  # [max_len, 1, d_model]

    def __call__(self, x: jax.Array, *, training: bool = False,
                 rng_key: jax.Array | None = None) -> jax.Array:
        """x: [seq_len, batch, d_model] -> same shape."""
        S, B, D = x.shape
        pe_slice = self.pe[:S].astype(x.dtype)           # pe in activation dtype
        itemsize = jnp.dtype(x.dtype).itemsize

        ts, tb = _choose_tiles(S, B, D, itemsize)
        # Batch axis innermost: pe block index (i, 0, 0) is constant across it,
        # so its DMA is skipped between consecutive batch tiles.
        grid = (pl.cdiv(S, ts), pl.cdiv(B, tb))

        x_spec = pl.BlockSpec((ts, tb, D), lambda i, j: (i, j, 0))
        pe_spec = pl.BlockSpec((ts, 1, D), lambda i, j: (i, 0, 0))
        out_spec = pl.BlockSpec((ts, tb, D), lambda i, j: (i, j, 0))
        compiler_params = pltpu.CompilerParams(
            dimension_semantics=("parallel", "parallel"))

        if (not training) or self.p == 0.0:
            # Eval mode: dropout is the identity; kernel does the broadcast add.
            cost = pl.CostEstimate(
                flops=S * B * D,
                transcendentals=0,
                bytes_accessed=2 * S * B * D * itemsize + S * D * itemsize,
            )
            return pl.pallas_call(
                _pe_add_kernel,
                out_shape=jax.ShapeDtypeStruct((S, B, D), x.dtype),
                grid=grid,
                in_specs=[x_spec, pe_spec],
                out_specs=out_spec,
                compiler_params=compiler_params,
                cost_estimate=cost,
            )(x, pe_slice)

        # Training mode: add + inverted dropout. Random bits are generated
        # outside the kernel (portable across TPU compile and interpret mode)
        # and compared against an integer threshold inside the kernel.
        if rng_key is None:
            rng_key = jax.random.PRNGKey(0)
        bits = jax.random.bits(rng_key, (S, B, D), dtype=jnp.uint32)
        threshold = min(int(round(self.p * (2 ** 32))), 2 ** 32 - 1)
        scale = 1.0 / (1.0 - self.p)

        kernel = functools.partial(
            _pe_add_dropout_kernel, threshold=threshold, scale=scale)
        cost = pl.CostEstimate(
            flops=3 * S * B * D,
            transcendentals=0,
            bytes_accessed=(2 * S * B * D * itemsize
                            + S * D * itemsize
                            + S * B * D * 4),
        )
        return pl.pallas_call(
            kernel,
            out_shape=jax.ShapeDtypeStruct((S, B, D), x.dtype),
            grid=grid,
            in_specs=[x_spec, pe_spec, x_spec],       # bits reuses the x tiling
            out_specs=out_spec,
            compiler_params=compiler_params,
            cost_estimate=cost,
        )(x, pe_slice, bits)


# ---------------------------------------------------------------------------
# Main
# ---------------------------------------------------------------------------
if __name__ == "__main__":
    seq_len, batch, d_model = 8, 2, 32

    key = jax.random.PRNGKey(0)
    kx, kd = jax.random.split(key)
    x = jax.random.normal(kx, (seq_len, batch, d_model), dtype=jnp.float32)

    module = PositionalEncoding(d_model=d_model, dropout=0.1, max_len=64)

    # Eval-mode forward (deterministic).
    out = jax.block_until_ready(module(x, training=False))
    ref = x + module.pe[:seq_len]
    np.testing.assert_allclose(np.asarray(out), np.asarray(ref), rtol=1e-6, atol=1e-6)

    # Training-mode (dropout) kernel, checked against a reference built from
    # the same random bits.
    out_train = jax.block_until_ready(module(x, training=True, rng_key=kd))
    bits = jax.random.bits(kd, (seq_len, batch, d_model), dtype=jnp.uint32)
    thr = min(int(round(module.p * (2 ** 32))), 2 ** 32 - 1)
    keep = np.asarray(bits) >= np.uint32(thr)
    ref_train = np.where(keep, np.asarray(ref) / (1.0 - module.p), 0.0)
    np.testing.assert_allclose(np.asarray(out_train), ref_train, rtol=1e-5, atol=1e-5)

    print("KERNEL_OK")
</pallas_src>

<mosaic_0001>
module attributes {stable_mosaic.version = 11 : i64} {
  func.func @_pe_add_kernel(%arg0: i32, %arg1: i32, %arg2: memref<8x2x32xf32, #tpu.memory_space<vmem>>, %arg3: memref<8x1x32xf32, #tpu.memory_space<vmem>>, %arg4: memref<8x2x32xf32, #tpu.memory_space<vmem>>) attributes {dimension_semantics = [#tpu.dimension_semantics<parallel>, #tpu.dimension_semantics<parallel>], iteration_bounds = array<i64: 1, 1>, scalar_prefetch = 0 : i64, scratch_operands = 0 : i64, tpu.core_type = #tpu.core_type<tc>, window_params = [{transform_indices = @transform_0, window_bounds = array<i64: 8, 2, 32>}, {transform_indices = @transform_1, window_bounds = array<i64: 8, 1, 32>}, {transform_indices = @transform_2, window_bounds = array<i64: 8, 2, 32>}]} {
    %c0 = arith.constant 0 : index
    %c0_0 = arith.constant 0 : index
    %c0_1 = arith.constant 0 : index
    %0 = vector.load %arg2[%c0, %c0_0, %c0_1] : memref<8x2x32xf32, #tpu.memory_space<vmem>>, vector<8x2x32xf32>
    %c0_2 = arith.constant 0 : index
    %c0_3 = arith.constant 0 : index
    %c0_4 = arith.constant 0 : index
    %1 = vector.load %arg3[%c0_2, %c0_3, %c0_4] : memref<8x1x32xf32, #tpu.memory_space<vmem>>, vector<8x1x32xf32>
    %2 = vector.broadcast %1 : vector<8x1x32xf32> to vector<8x2x32xf32>
    %3 = arith.addf %0, %2 : vector<8x2x32xf32>
    %c0_5 = arith.constant 0 : index
    %c0_6 = arith.constant 0 : index
    %c0_7 = arith.constant 0 : index
    %4 = vector.load %arg4[%c0_5, %c0_6, %c0_7] : memref<8x2x32xf32, #tpu.memory_space<vmem>>, vector<8x2x32xf32>
    tpu.vector_store %arg4[%c0_5, %c0_6, %c0_7], %3 {strides = array<i32>} : memref<8x2x32xf32, #tpu.memory_space<vmem>>, vector<8x2x32xf32>,
    return
  }
  func.func @transform_0(%arg0: i32, %arg1: i32) -> (i32, i32, i32) {
    %c0_i32 = arith.constant 0 : i32
    %c0_i32_0 = arith.constant 0 : i32
    return %arg0, %arg1, %c0_i32 : i32, i32, i32
  }
  func.func @transform_1(%arg0: i32, %arg1: i32) -> (i32, i32, i32) {
    %c0_i32 = arith.constant 0 : i32
    %c0_i32_0 = arith.constant 0 : i32
    %c0_i32_1 = arith.constant 0 : i32
    return %arg0, %c0_i32, %c0_i32_0 : i32, i32, i32
  }
  func.func @transform_2(%arg0: i32, %arg1: i32) -> (i32, i32, i32) {
    %c0_i32 = arith.constant 0 : i32
    %c0_i32_0 = arith.constant 0 : i32
    return %arg0, %arg1, %c0_i32 : i32, i32, i32
  }
}

</mosaic_0001>

<bundles_post_ra>
// kernel: tpu_custom_call.1
= control target key start
LH: loop header
LB: loop body
LE: loop exit
PB: predicated region body
PF: predicated region fallthrough
CT: control target
= control target key end

     0   :  { %7 = vsyncpa [#allocation3], 0  ;;  %s266_s0 = inlined_call_operand.hbm [shape: f32[8,2,32], index: 0, kind: input, shape index: {}]   ;;  %s267_s1 = inlined_call_operand.hbm [shape: f32[8,1,32], index: 1, kind: input, shape index: {}]   ;;  %s268_s2 = inlined_call_operand.hbm [shape: f32[8,2,32], index: 2, kind: output, shape index: {}]  }
   0x1   :  { %8 = vsyncpa [#allocation6], 0 }
   0x2   :  { %9 = vsyncpa [#allocation4], 0  ;;  %s14_s11 = sshll.u32 %s266_s0, 4  ;;  %s214_s12 = smov [#allocation2]   ;;  %s15_s11 = int_to_ptr.hbm [resolvable:$true] %s14_s11 }
   0x3   :  { %s16_s13 = sshll.u32 %s214_s12, 4  ;;  %s27_s16 = sshll.u32 %s267_s1, 4  ;;  %s17_s13 = int_to_ptr.vmem [resolvable:$true] %s16_s13  ;;  %s28_s16 = int_to_ptr.hbm [resolvable:$true] %s27_s16 }
   0x4   :  { %s215_s17 = smov 32   ;;  %s216_s18 = smov 2  }
   0x5   :  { %22 = dma.hbm_to_vmem [thread:$0]  %s15_s11, 256, %s17_s13, [#allocation3], %s215_s17, %s215_s17, %s216_s18  }
   0x6   :  { %s217_s19 = smov [#allocation5]   ;;  %s218_s21 = smov 16  }
   0x7   :  { %s29_s20 = sshll.u32 %s217_s19, 4  ;;  %s219_s0 = smov 1   ;;  %s30_s20 = int_to_ptr.vmem [resolvable:$true] %s29_s20 }
   0x8   :  { %35 = dma.hbm_to_vmem [thread:$0]  %s28_s16, 128, %s30_s20, [#allocation6], %s218_s21, %s218_s21, %s219_s0  }
   0x9   :  { %208 = dma.done.wait [#allocation3], 256  }
   0xa   :  { %209 = vsyncadd [#allocation3], 4294967040 }
   0xb   :  { %210 = dma.done.wait [#allocation6], 128  }
   0xc   :  { %211 = vsyncadd [#allocation6], 4294967168  ;;  %vm92_vm0 = vcmask 254976   ;;  %s220_s22 = smov [#allocation7]   ;;  %s107_s25 = sshll.u32 %s268_s2, 4  ;;  %s108_s25 = int_to_ptr.hbm [resolvable:$true] %s107_s25 }
   0xd   :  { %s245_s1 = sshll.u32 %s220_s22, 4  ;;  %v44_v0 = vld [vmem:[#allocation2] sm:$0x3]  ;;  %v128_v1 = vld [vmem:[#allocation5] ss:$0 sm:$0xff]  ;;  %s106_s1 = int_to_ptr.vmem [resolvable:$true] %s245_s1 }
   0xe   :  { %v45_v2 = vld [vmem:[#allocation2 + $0x2] sm:$0x3]  ;;  %v129_v3 = vld [vmem:[#allocation5 + $0x1] ss:$0 sm:$0xff]  ;;  %v84_v4 = vadd.f32 %v128_v1, %v44_v0  ;;  %v46_v5 = vld [vmem:[#allocation2 + $0x4] sm:$0x3] }
   0xf   :  { %v130_v6 = vld [vmem:[#allocation5 + $0x2] ss:$0 sm:$0xff]  ;;  %v85_v7 = vadd.f32 %v129_v3, %v45_v2  ;;  %v47_v8 = vld [vmem:[#allocation2 + $0x6] sm:$0x3]  ;;  %v131_v9 = vld [vmem:[#allocation5 + $0x3] ss:$0 sm:$0xff] }
  0x10   :  { %93 = vst.msk [vmem:[#allocation7] sm:$0x3] %vm92_vm0, %v84_v4  ;;  %v86_v10 = vadd.f32 %v130_v6, %v46_v5  ;;  %v48_v11 = vld [vmem:[#allocation2 + $0x8] sm:$0x3]  ;;  %v87_v12 = vadd.f32 %v131_v9, %v47_v8  ;;  %v132_v13 = vld [vmem:[#allocation5 + $0x4] ss:$0 sm:$0xff] }
  0x11   :  { %94 = vst.msk [vmem:[#allocation7 + $0x2] sm:$0x3] %vm92_vm0, %v85_v7  ;;  %v49_v14 = vld [vmem:[#allocation2 + $0xa] sm:$0x3]  ;;  %v133_v15 = vld [vmem:[#allocation5 + $0x5] ss:$0 sm:$0xff]  ;;  %v88_v16 = vadd.f32 %v132_v13, %v48_v11 }
  0x12   :  { %95 = vst.msk [vmem:[#allocation7 + $0x4] sm:$0x3] %vm92_vm0, %v86_v10  ;;  %v50_v17 = vld [vmem:[#allocation2 + $0xc] sm:$0x3]  ;;  %v89_v18 = vadd.f32 %v133_v15, %v49_v14  ;;  %v134_v19 = vld [vmem:[#allocation5 + $0x6] ss:$0 sm:$0xff] }
  0x13   :  { %96 = vst.msk [vmem:[#allocation7 + $0x6] sm:$0x3] %vm92_vm0, %v87_v12  ;;  %v51_v20 = vld [vmem:[#allocation2 + $0xe] sm:$0x3]  ;;  %v135_v21 = vld [vmem:[#allocation5 + $0x7] ss:$0 sm:$0xff]  ;;  %v90_v22 = vadd.f32 %v134_v19, %v50_v17 }
  0x14   :  { %97 = vst.msk [vmem:[#allocation7 + $0x8] sm:$0x3] %vm92_vm0, %v88_v16  ;;  %v91_v23 = vadd.f32 %v135_v21, %v51_v20 }
  0x15   :  { %98 = vst.msk [vmem:[#allocation7 + $0xa] sm:$0x3] %vm92_vm0, %v89_v18 }
  0x16   :  { %99 = vst.msk [vmem:[#allocation7 + $0xc] sm:$0x3] %vm92_vm0, %v90_v22 }
  0x17   :  { %100 = vst.msk [vmem:[#allocation7 + $0xe] sm:$0x3] %vm92_vm0, %v91_v23 }
  0x18   :  { %113 = dma.vmem_to_hbm [thread:$0]  %s106_s1, 256, %s108_s25, [#allocation4], %s215_s17, %s215_s17, %s216_s18  }
  0x19   :  { %212 = dma.done.wait [#allocation4], 256  }
  0x1a   :  { %213 = vsyncadd [#allocation4], 4294967040 }
  0x1b   :  { %118 = vsyncpa [#allocation3], 1 }
  0x1c   :  { %119 = vsyncpa [#allocation6], 1 }
  0x1d   :  { %120 = vsyncpa [#allocation4], 1 }

</bundles_post_ra>
